<compile_context>
chip_gen: v7x
topology: tpu7x:2x2x1
jax: 0.10.0
libtpu: 0.0.40
codegen_flags: <defaults>
</compile_context>

<pallas_src>
import functools

import jax
import jax.numpy as jnp
from jax.experimental import pallas as pl
from jax.experimental.pallas import tpu as pltpu

_LANES = 128
_MAX_TM = 2048      # 2048 rows * 128 lanes * 4 B = 1 MiB per operand block
_MIN_TM = 256       # keep multi-block tiles >= 128 KiB per operand


def _round_up(x, m):
    return ((x + m - 1) // m) * m


def _cdiv(a, b):
    return (a + b - 1) // b


def _pick_tm(rows):
    """Block row count.  `rows` is a multiple of 8; result is a multiple of 8."""
    if rows <= 1024:
        return rows                     # whole tensor in a single block
    # Aim for >= 8 blocks so both v7x TensorCores get work, while keeping each
    # block between 128 KiB and 1 MiB per operand (near the HBM roofline).
    tm = _round_up(_cdiv(rows, 8), 8)
    return int(min(_MAX_TM, max(_MIN_TM, tm)))


def _masked_sse_kernel(x_ref, t_ref, out_ref, *, tm, full_rows, tail, need_mask):
    """Per-block masked partial sums.

    Writes one (16, 128) block: rows 0:8 hold the partial sum of (x - t)^2,
    rows 8:16 hold the partial count of valid (non-NaN, in-range) entries.
    Pure VPU work in a fori_loop over (8,128) sublane groups with explicit
    vreg accumulators; the tiny cross-lane reductions happen outside.
    """
    d = x_ref.shape[-1]
    ngroups = tm // 8
    block_row0 = pl.program_id(0) * tm

    if need_mask:
        # Hoisted once (broadcasts are not CSE'd if created per iteration).
        row_in_group = jax.lax.broadcasted_iota(jnp.int32, (8, d), 0)
        lane_idx = jax.lax.broadcasted_iota(jnp.int32, (8, d), 1)

    def body(g, carry):
        sse, cnt = carry
        r0 = pl.multiple_of(g * 8, 8)
        x = x_ref[pl.ds(r0, 8), :].astype(jnp.float32)
        t = t_ref[pl.ds(r0, 8), :].astype(jnp.float32)
        not_nan = jnp.logical_not(jnp.isnan(t))
        if need_mask:
            row_idx = block_row0 + r0 + row_in_group
            if tail:
                in_range = jnp.logical_or(
                    row_idx < full_rows,
                    jnp.logical_and(row_idx == full_rows, lane_idx < tail))
            else:
                in_range = row_idx < full_rows
            valid = jnp.logical_and(in_range, not_nan)
        else:
            valid = not_nan
        diff = jnp.where(valid, x - t, 0.0)      # single where; garbage-safe
        return sse + diff * diff, cnt + valid.astype(jnp.float32)

    if ngroups <= 16:
        unroll = True
    elif ngroups % 8 == 0:
        unroll = 8
    elif ngroups % 4 == 0:
        unroll = 4
    else:
        unroll = 2 if ngroups % 2 == 0 else 1

    sse, cnt = jax.lax.fori_loop(
        0, ngroups, body,
        (jnp.zeros((8, d), jnp.float32), jnp.zeros((8, d), jnp.float32)),
        unroll=unroll)

    out_ref[0:8, :] = sse
    out_ref[8:16, :] = cnt


def _masked_mse_one(x, t):
    """Masked-mean MSE for one (input, target) pair via a single pallas_call."""
    assert x.shape == t.shape
    n = x.size
    d = _LANES

    xf = x.reshape(-1)                  # free inside jit (contiguous)
    tf = t.reshape(-1)
    pad = (-n) % (8 * d)                # pad only to one sublane row-group
    if pad:
        xf = jnp.pad(xf, (0, pad))      # zeros; index mask excludes them
        tf = jnp.pad(tf, (0, pad))
    x2 = xf.reshape(-1, d)
    t2 = tf.reshape(-1, d)
    rows = x2.shape[0]

    tm = _pick_tm(rows)
    num_blocks = _cdiv(rows, tm)
    full_rows, tail = divmod(n, d)
    need_mask = not (tail == 0 and full_rows == rows and rows % tm == 0)

    kernel = functools.partial(
        _masked_sse_kernel, tm=tm, full_rows=full_rows, tail=tail,
        need_mask=need_mask)

    out = pl.pallas_call(
        kernel,
        out_shape=jax.ShapeDtypeStruct((num_blocks * 16, d), jnp.float32),
        grid_spec=pltpu.PrefetchScalarGridSpec(
            num_scalar_prefetch=0,
            grid=(num_blocks,),
            in_specs=[
                pl.BlockSpec((tm, d), lambda i: (i, 0)),
                pl.BlockSpec((tm, d), lambda i: (i, 0)),
            ],
            out_specs=pl.BlockSpec((16, d), lambda i: (i, 0)),
        ),
        compiler_params=pltpu.CompilerParams(
            # Independent blocks: lets the grid shard across both TensorCores
            # on v7x; harmless on single-core v5e/v6e.
            dimension_semantics=("parallel",),
            # 2 operands x 2 buffers x <=1 MiB + tiny outputs ~= 4-5 MiB; this
            # limit is safe on every generation (<= v6e/v7x scoped defaults).
            vmem_limit_bytes=32 * 1024 * 1024,
        ),
    )(x2, t2)

    o = out.reshape(num_blocks, 2, 8 * d)
    sse = jnp.sum(o[:, 0, :])
    # Per-position counts are small exact f32 integers (<= tm/8 per group sum
    # <= 256); fold to int32 so the total stays exact up to 2^31 valid entries.
    cnt = jnp.sum(o[:, 1, :].astype(jnp.int32))
    # TODO(synk): use i64/f64 epilogue accumulation (needs jax_enable_x64) for
    # tensors with more than 2^31 valid entries.
    return sse / cnt.astype(jnp.float32)


@jax.jit
def _list_mse(xs, ts, w):
    losses = jnp.stack([_masked_mse_one(x, t) for x, t in zip(xs, ts)])
    return jnp.sum(w * losses) / jnp.sum(w)


def list_loss(inputs, targets, weights=None):
    """JAX/Pallas equivalent of ListLoss.forward with torch_loss = MSE(mean)."""
    assert len(inputs) == len(targets) and len(inputs) > 0
    n_elem = len(inputs)
    if weights is None:
        w = jnp.ones((n_elem,), jnp.float32)
    else:
        # No Python truthiness on arrays; empty sequence -> unit weights
        # (matches the PyTorch `if self.weights:` fallback).
        w = jnp.asarray(weights, jnp.float32).reshape(-1)
        if w.shape[0] == 0:
            w = jnp.ones((n_elem,), jnp.float32)
    return _list_mse(tuple(inputs), tuple(targets), w)


def _reference_list_loss(inputs, targets, weights=None):
    """Pure-JAX reference matching the PyTorch semantics (masked mean MSE)."""
    loss = 0.0
    weight_sum = 0.0
    for i, (x, t) in enumerate(zip(inputs, targets)):
        w = weights[i] if weights else 1.0
        mask = jnp.logical_not(jnp.isnan(t))
        diff = jnp.where(mask, x - jnp.where(mask, t, 0.0), 0.0)
        loss = loss + w * (jnp.sum(diff * diff) / jnp.sum(mask))
        weight_sum += w
    return loss / weight_sum


if __name__ == "__main__":
    key = jax.random.PRNGKey(0)
    shapes = [(16, 128), (32, 128), (16, 128)]   # small, deterministic demo
    weights = [0.5, 1.0, 2.0]

    inputs, targets = [], []
    for s in shapes:
        key, k1, k2, k3 = jax.random.split(key, 4)
        x = jax.random.normal(k1, s, dtype=jnp.float32)
        t = jax.random.normal(k2, s, dtype=jnp.float32)
        # Inject NaNs into ~20% of target entries (these must be masked out).
        nan_mask = jax.random.uniform(k3, s) < 0.2
        t = jnp.where(nan_mask, jnp.nan, t)
        inputs.append(x)
        targets.append(t)

    out = list_loss(inputs, targets, weights)
    out = jax.block_until_ready(out)

    ref = _reference_list_loss(inputs, targets, weights)
    assert jnp.isfinite(out), "loss is not finite"
    assert jnp.allclose(out, ref, rtol=1e-5, atol=1e-5), (out, ref)

    print("KERNEL_OK")
</pallas_src>

<mosaic_0001>
module attributes {stable_mosaic.version = 11 : i64} {
  func.func @_masked_sse_kernel(%arg0: i32, %arg1: memref<16x128xf32, #tpu.memory_space<vmem>>, %arg2: memref<16x128xf32, #tpu.memory_space<vmem>>, %arg3: memref<16x128xf32, #tpu.memory_space<vmem>>) attributes {dimension_semantics = [#tpu.dimension_semantics<parallel>], iteration_bounds = array<i64: 1>, scalar_prefetch = 0 : i64, scratch_operands = 0 : i64, tpu.core_type = #tpu.core_type<tc>, window_params = [{transform_indices = @transform_0, window_bounds = array<i64: 16, 128>}, {transform_indices = @transform_1, window_bounds = array<i64: 16, 128>}, {transform_indices = @transform_2, window_bounds = array<i64: 16, 128>}]} {
    %cst = arith.constant 0.000000e+00 : f32
    %0 = vector.broadcast %cst : f32 to vector<8x128xf32>
    %cst_0 = arith.constant 0.000000e+00 : f32
    %1 = vector.broadcast %cst_0 : f32 to vector<8x128xf32>
    %c0_i32 = arith.constant 0 : i32
    %c8_i32 = arith.constant 8 : i32
    %2 = arith.muli %c0_i32, %c8_i32 : i32
    %3 = tpu.assume_multiple %2, 8 : i32
    %4 = arith.index_cast %3 : i32 to index
    %c0 = arith.constant 0 : index
    %5 = vector.load %arg1[%4, %c0] : memref<16x128xf32, #tpu.memory_space<vmem>>, vector<8x128xf32>
    %6 = arith.index_cast %3 : i32 to index
    %c0_1 = arith.constant 0 : index
    %7 = vector.load %arg2[%6, %c0_1] : memref<16x128xf32, #tpu.memory_space<vmem>>, vector<8x128xf32>
    %8 = arith.cmpf one, %7, %7 : vector<8x128xf32>
    %cst_2 = arith.constant dense<true> : vector<8x128xi1>
    %9 = arith.xori %8, %cst_2 : vector<8x128xi1>
    %10 = arith.subf %5, %7 : vector<8x128xf32>
    %cst_3 = arith.constant 0.000000e+00 : f32
    %11 = vector.broadcast %cst_3 : f32 to vector<8x128xf32>
    %12 = arith.select %9, %10, %11 : vector<8x128xi1>, vector<8x128xf32>
    %13 = arith.mulf %12, %12 : vector<8x128xf32>
    %14 = arith.addf %0, %13 : vector<8x128xf32>
    %15 = arith.extui %9 : vector<8x128xi1> to vector<8x128xi32>
    %16 = arith.sitofp %15 : vector<8x128xi32> to vector<8x128xf32>
    %17 = arith.addf %1, %16 : vector<8x128xf32>
    %c1_i32 = arith.constant 1 : i32
    %c8_i32_4 = arith.constant 8 : i32
    %18 = arith.muli %c1_i32, %c8_i32_4 : i32
    %19 = tpu.assume_multiple %18, 8 : i32
    %20 = arith.index_cast %19 : i32 to index
    %c0_5 = arith.constant 0 : index
    %21 = vector.load %arg1[%20, %c0_5] : memref<16x128xf32, #tpu.memory_space<vmem>>, vector<8x128xf32>
    %22 = arith.index_cast %19 : i32 to index
    %c0_6 = arith.constant 0 : index
    %23 = vector.load %arg2[%22, %c0_6] : memref<16x128xf32, #tpu.memory_space<vmem>>, vector<8x128xf32>
    %24 = arith.cmpf one, %23, %23 : vector<8x128xf32>
    %cst_7 = arith.constant dense<true> : vector<8x128xi1>
    %25 = arith.xori %24, %cst_7 : vector<8x128xi1>
    %26 = arith.subf %21, %23 : vector<8x128xf32>
    %cst_8 = arith.constant 0.000000e+00 : f32
    %27 = vector.broadcast %cst_8 : f32 to vector<8x128xf32>
    %28 = arith.select %25, %26, %27 : vector<8x128xi1>, vector<8x128xf32>
    %29 = arith.mulf %28, %28 : vector<8x128xf32>
    %30 = arith.addf %14, %29 : vector<8x128xf32>
    %31 = arith.extui %25 : vector<8x128xi1> to vector<8x128xi32>
    %32 = arith.sitofp %31 : vector<8x128xi32> to vector<8x128xf32>
    %33 = arith.addf %17, %32 : vector<8x128xf32>
    %c2_i32 = arith.constant 2 : i32
    %c0_9 = arith.constant 0 : index
    %c0_10 = arith.constant 0 : index
    %34 = vector.load %arg3[%c0_9, %c0_10] : memref<16x128xf32, #tpu.memory_space<vmem>>, vector<8x128xf32>
    tpu.vector_store %arg3[%c0_9, %c0_10], %30 {strides = array<i32>} : memref<16x128xf32, #tpu.memory_space<vmem>>, vector<8x128xf32>,
    %c8 = arith.constant 8 : index
    %c0_11 = arith.constant 0 : index
    %35 = vector.load %arg3[%c8, %c0_11] : memref<16x128xf32, #tpu.memory_space<vmem>>, vector<8x128xf32>
    tpu.vector_store %arg3[%c8, %c0_11], %33 {strides = array<i32>} : memref<16x128xf32, #tpu.memory_space<vmem>>, vector<8x128xf32>,
    return
  }
  func.func @transform_0(%arg0: i32) -> (i32, i32) {
    %c0_i32 = arith.constant 0 : i32
    %c0_i32_0 = arith.constant 0 : i32
    return %arg0, %c0_i32 : i32, i32
  }
  func.func @transform_1(%arg0: i32) -> (i32, i32) {
    %c0_i32 = arith.constant 0 : i32
    %c0_i32_0 = arith.constant 0 : i32
    return %arg0, %c0_i32 : i32, i32
  }
  func.func @transform_2(%arg0: i32) -> (i32, i32) {
    %c0_i32 = arith.constant 0 : i32
    %c0_i32_0 = arith.constant 0 : i32
    return %arg0, %c0_i32 : i32, i32
  }
}

module attributes {stable_mosaic.version = 11 : i64} {
  func.func @_masked_sse_kernel(%arg0: i32, %arg1: memref<16x128xf32, #tpu.memory_space<vmem>>, %arg2: memref<16x128xf32, #tpu.memory_space<vmem>>, %arg3: memref<16x128xf32, #tpu.memory_space<vmem>>) attributes {dimension_semantics = [#tpu.dimension_semantics<parallel>], iteration_bounds = array<i64: 1>, scalar_prefetch = 0 : i64, scratch_operands = 0 : i64, tpu.core_type = #tpu.core_type<tc>, window_params = [{transform_indices = @transform_0, window_bounds = array<i64: 16, 128>}, {transform_indices = @transform_1, window_bounds = array<i64: 16, 128>}, {transform_indices = @transform_2, window_bounds = array<i64: 16, 128>}]} {
    %cst = arith.constant 0.000000e+00 : f32
    %0 = vector.broadcast %cst : f32 to vector<8x128xf32>
    %cst_0 = arith.constant 0.000000e+00 : f32
    %1 = vector.broadcast %cst_0 : f32 to vector<8x128xf32>
    %c0_i32 = arith.constant 0 : i32
    %c8_i32 = arith.constant 8 : i32
    %2 = arith.muli %c0_i32, %c8_i32 : i32
    %3 = tpu.assume_multiple %2, 8 : i32
    %4 = arith.index_cast %3 : i32 to index
    %c0 = arith.constant 0 : index
    %5 = vector.load %arg1[%4, %c0] : memref<16x128xf32, #tpu.memory_space<vmem>>, vector<8x128xf32>
    %6 = arith.index_cast %3 : i32 to index
    %c0_1 = arith.constant 0 : index
    %7 = vector.load %arg2[%6, %c0_1] : memref<16x128xf32, #tpu.memory_space<vmem>>, vector<8x128xf32>
    %8 = arith.cmpf one, %7, %7 : vector<8x128xf32>
    %cst_2 = arith.constant dense<true> : vector<8x128xi1>
    %9 = arith.xori %8, %cst_2 : vector<8x128xi1>
    %10 = arith.subf %5, %7 : vector<8x128xf32>
    %cst_3 = arith.constant 0.000000e+00 : f32
    %11 = vector.broadcast %cst_3 : f32 to vector<8x128xf32>
    %12 = arith.select %9, %10, %11 : vector<8x128xi1>, vector<8x128xf32>
    %13 = arith.mulf %12, %12 : vector<8x128xf32>
    %14 = arith.addf %0, %13 : vector<8x128xf32>
    %15 = arith.extui %9 : vector<8x128xi1> to vector<8x128xi32>
    %16 = arith.sitofp %15 : vector<8x128xi32> to vector<8x128xf32>
    %17 = arith.addf %1, %16 : vector<8x128xf32>
    %c1_i32 = arith.constant 1 : i32
    %c8_i32_4 = arith.constant 8 : i32
    %18 = arith.muli %c1_i32, %c8_i32_4 : i32
    %19 = tpu.assume_multiple %18, 8 : i32
    %20 = arith.index_cast %19 : i32 to index
    %c0_5 = arith.constant 0 : index
    %21 = vector.load %arg1[%20, %c0_5] : memref<16x128xf32, #tpu.memory_space<vmem>>, vector<8x128xf32>
    %22 = arith.index_cast %19 : i32 to index
    %c0_6 = arith.constant 0 : index
    %23 = vector.load %arg2[%22, %c0_6] : memref<16x128xf32, #tpu.memory_space<vmem>>, vector<8x128xf32>
    %24 = arith.cmpf one, %23, %23 : vector<8x128xf32>
    %cst_7 = arith.constant dense<true> : vector<8x128xi1>
    %25 = arith.xori %24, %cst_7 : vector<8x128xi1>
    %26 = arith.subf %21, %23 : vector<8x128xf32>
    %cst_8 = arith.constant 0.000000e+00 : f32
    %27 = vector.broadcast %cst_8 : f32 to vector<8x128xf32>
    %28 = arith.select %25, %26, %27 : vector<8x128xi1>, vector<8x128xf32>
    %29 = arith.mulf %28, %28 : vector<8x128xf32>
    %30 = arith.addf %14, %29 : vector<8x128xf32>
    %31 = arith.extui %25 : vector<8x128xi1> to vector<8x128xi32>
    %32 = arith.sitofp %31 : vector<8x128xi32> to vector<8x128xf32>
    %33 = arith.addf %17, %32 : vector<8x128xf32>
    %c2_i32 = arith.constant 2 : i32
    %c0_9 = arith.constant 0 : index
    %c0_10 = arith.constant 0 : index
    %34 = vector.load %arg3[%c0_9, %c0_10] : memref<16x128xf32, #tpu.memory_space<vmem>>, vector<8x128xf32>
    tpu.vector_store %arg3[%c0_9, %c0_10], %30 {strides = array<i32>} : memref<16x128xf32, #tpu.memory_space<vmem>>, vector<8x128xf32>,
    %c8 = arith.constant 8 : index
    %c0_11 = arith.constant 0 : index
    %35 = vector.load %arg3[%c8, %c0_11] : memref<16x128xf32, #tpu.memory_space<vmem>>, vector<8x128xf32>
    tpu.vector_store %arg3[%c8, %c0_11], %33 {strides = array<i32>} : memref<16x128xf32, #tpu.memory_space<vmem>>, vector<8x128xf32>,
    return
  }
  func.func @transform_0(%arg0: i32) -> (i32, i32) {
    %c0_i32 = arith.constant 0 : i32
    %c0_i32_0 = arith.constant 0 : i32
    return %arg0, %c0_i32 : i32, i32
  }
  func.func @transform_1(%arg0: i32) -> (i32, i32) {
    %c0_i32 = arith.constant 0 : i32
    %c0_i32_0 = arith.constant 0 : i32
    return %arg0, %c0_i32 : i32, i32
  }
  func.func @transform_2(%arg0: i32) -> (i32, i32) {
    %c0_i32 = arith.constant 0 : i32
    %c0_i32_0 = arith.constant 0 : i32
    return %arg0, %c0_i32 : i32, i32
  }
}

module attributes {stable_mosaic.version = 11 : i64} {
  func.func @_masked_sse_kernel(%arg0: i32, %arg1: memref<32x128xf32, #tpu.memory_space<vmem>>, %arg2: memref<32x128xf32, #tpu.memory_space<vmem>>, %arg3: memref<16x128xf32, #tpu.memory_space<vmem>>) attributes {dimension_semantics = [#tpu.dimension_semantics<parallel>], iteration_bounds = array<i64: 1>, scalar_prefetch = 0 : i64, scratch_operands = 0 : i64, tpu.core_type = #tpu.core_type<tc>, window_params = [{transform_indices = @transform_0, window_bounds = array<i64: 32, 128>}, {transform_indices = @transform_1, window_bounds = array<i64: 32, 128>}, {transform_indices = @transform_2, window_bounds = array<i64: 16, 128>}]} {
    %cst = arith.constant 0.000000e+00 : f32
    %0 = vector.broadcast %cst : f32 to vector<8x128xf32>
    %cst_0 = arith.constant 0.000000e+00 : f32
    %1 = vector.broadcast %cst_0 : f32 to vector<8x128xf32>
    %c0_i32 = arith.constant 0 : i32
    %c8_i32 = arith.constant 8 : i32
    %2 = arith.muli %c0_i32, %c8_i32 : i32
    %3 = tpu.assume_multiple %2, 8 : i32
    %4 = arith.index_cast %3 : i32 to index
    %c0 = arith.constant 0 : index
    %5 = vector.load %arg1[%4, %c0] : memref<32x128xf32, #tpu.memory_space<vmem>>, vector<8x128xf32>
    %6 = arith.index_cast %3 : i32 to index
    %c0_1 = arith.constant 0 : index
    %7 = vector.load %arg2[%6, %c0_1] : memref<32x128xf32, #tpu.memory_space<vmem>>, vector<8x128xf32>
    %8 = arith.cmpf one, %7, %7 : vector<8x128xf32>
    %cst_2 = arith.constant dense<true> : vector<8x128xi1>
    %9 = arith.xori %8, %cst_2 : vector<8x128xi1>
    %10 = arith.subf %5, %7 : vector<8x128xf32>
    %cst_3 = arith.constant 0.000000e+00 : f32
    %11 = vector.broadcast %cst_3 : f32 to vector<8x128xf32>
    %12 = arith.select %9, %10, %11 : vector<8x128xi1>, vector<8x128xf32>
    %13 = arith.mulf %12, %12 : vector<8x128xf32>
    %14 = arith.addf %0, %13 : vector<8x128xf32>
    %15 = arith.extui %9 : vector<8x128xi1> to vector<8x128xi32>
    %16 = arith.sitofp %15 : vector<8x128xi32> to vector<8x128xf32>
    %17 = arith.addf %1, %16 : vector<8x128xf32>
    %c1_i32 = arith.constant 1 : i32
    %c8_i32_4 = arith.constant 8 : i32
    %18 = arith.muli %c1_i32, %c8_i32_4 : i32
    %19 = tpu.assume_multiple %18, 8 : i32
    %20 = arith.index_cast %19 : i32 to index
    %c0_5 = arith.constant 0 : index
    %21 = vector.load %arg1[%20, %c0_5] : memref<32x128xf32, #tpu.memory_space<vmem>>, vector<8x128xf32>
    %22 = arith.index_cast %19 : i32 to index
    %c0_6 = arith.constant 0 : index
    %23 = vector.load %arg2[%22, %c0_6] : memref<32x128xf32, #tpu.memory_space<vmem>>, vector<8x128xf32>
    %24 = arith.cmpf one, %23, %23 : vector<8x128xf32>
    %cst_7 = arith.constant dense<true> : vector<8x128xi1>
    %25 = arith.xori %24, %cst_7 : vector<8x128xi1>
    %26 = arith.subf %21, %23 : vector<8x128xf32>
    %cst_8 = arith.constant 0.000000e+00 : f32
    %27 = vector.broadcast %cst_8 : f32 to vector<8x128xf32>
    %28 = arith.select %25, %26, %27 : vector<8x128xi1>, vector<8x128xf32>
    %29 = arith.mulf %28, %28 : vector<8x128xf32>
    %30 = arith.addf %14, %29 : vector<8x128xf32>
    %31 = arith.extui %25 : vector<8x128xi1> to vector<8x128xi32>
    %32 = arith.sitofp %31 : vector<8x128xi32> to vector<8x128xf32>
    %33 = arith.addf %17, %32 : vector<8x128xf32>
    %c2_i32 = arith.constant 2 : i32
    %c8_i32_9 = arith.constant 8 : i32
    %34 = arith.muli %c2_i32, %c8_i32_9 : i32
    %35 = tpu.assume_multiple %34, 8 : i32
    %36 = arith.index_cast %35 : i32 to index
    %c0_10 = arith.constant 0 : index
    %37 = vector.load %arg1[%36, %c0_10] : memref<32x128xf32, #tpu.memory_space<vmem>>, vector<8x128xf32>
    %38 = arith.index_cast %35 : i32 to index
    %c0_11 = arith.constant 0 : index
    %39 = vector.load %arg2[%38, %c0_11] : memref<32x128xf32, #tpu.memory_space<vmem>>, vector<8x128xf32>
    %40 = arith.cmpf one, %39, %39 : vector<8x128xf32>
    %cst_12 = arith.constant dense<true> : vector<8x128xi1>
    %41 = arith.xori %40, %cst_12 : vector<8x128xi1>
    %42 = arith.subf %37, %39 : vector<8x128xf32>
    %cst_13 = arith.constant 0.000000e+00 : f32
    %43 = vector.broadcast %cst_13 : f32 to vector<8x128xf32>
    %44 = arith.select %41, %42, %43 : vector<8x128xi1>, vector<8x128xf32>
    %45 = arith.mulf %44, %44 : vector<8x128xf32>
    %46 = arith.addf %30, %45 : vector<8x128xf32>
    %47 = arith.extui %41 : vector<8x128xi1> to vector<8x128xi32>
    %48 = arith.sitofp %47 : vector<8x128xi32> to vector<8x128xf32>
    %49 = arith.addf %33, %48 : vector<8x128xf32>
    %c3_i32 = arith.constant 3 : i32
    %c8_i32_14 = arith.constant 8 : i32
    %50 = arith.muli %c3_i32, %c8_i32_14 : i32
    %51 = tpu.assume_multiple %50, 8 : i32
    %52 = arith.index_cast %51 : i32 to index
    %c0_15 = arith.constant 0 : index
    %53 = vector.load %arg1[%52, %c0_15] : memref<32x128xf32, #tpu.memory_space<vmem>>, vector<8x128xf32>
    %54 = arith.index_cast %51 : i32 to index
    %c0_16 = arith.constant 0 : index
    %55 = vector.load %arg2[%54, %c0_16] : memref<32x128xf32, #tpu.memory_space<vmem>>, vector<8x128xf32>
    %56 = arith.cmpf one, %55, %55 : vector<8x128xf32>
    %cst_17 = arith.constant dense<true> : vector<8x128xi1>
    %57 = arith.xori %56, %cst_17 : vector<8x128xi1>
    %58 = arith.subf %53, %55 : vector<8x128xf32>
    %cst_18 = arith.constant 0.000000e+00 : f32
    %59 = vector.broadcast %cst_18 : f32 to vector<8x128xf32>
    %60 = arith.select %57, %58, %59 : vector<8x128xi1>, vector<8x128xf32>
    %61 = arith.mulf %60, %60 : vector<8x128xf32>
    %62 = arith.addf %46, %61 : vector<8x128xf32>
    %63 = arith.extui %57 : vector<8x128xi1> to vector<8x128xi32>
    %64 = arith.sitofp %63 : vector<8x128xi32> to vector<8x128xf32>
    %65 = arith.addf %49, %64 : vector<8x128xf32>
    %c4_i32 = arith.constant 4 : i32
    %c0_19 = arith.constant 0 : index
    %c0_20 = arith.constant 0 : index
    %66 = vector.load %arg3[%c0_19, %c0_20] : memref<16x128xf32, #tpu.memory_space<vmem>>, vector<8x128xf32>
    tpu.vector_store %arg3[%c0_19, %c0_20], %62 {strides = array<i32>} : memref<16x128xf32, #tpu.memory_space<vmem>>, vector<8x128xf32>,
    %c8 = arith.constant 8 : index
    %c0_21 = arith.constant 0 : index
    %67 = vector.load %arg3[%c8, %c0_21] : memref<16x128xf32, #tpu.memory_space<vmem>>, vector<8x128xf32>
    tpu.vector_store %arg3[%c8, %c0_21], %65 {strides = array<i32>} : memref<16x128xf32, #tpu.memory_space<vmem>>, vector<8x128xf32>,
    return
  }
  func.func @transform_0(%arg0: i32) -> (i32, i32) {
    %c0_i32 = arith.constant 0 : i32
    %c0_i32_0 = arith.constant 0 : i32
    return %arg0, %c0_i32 : i32, i32
  }
  func.func @transform_1(%arg0: i32) -> (i32, i32) {
    %c0_i32 = arith.constant 0 : i32
    %c0_i32_0 = arith.constant 0 : i32
    return %arg0, %c0_i32 : i32, i32
  }
  func.func @transform_2(%arg0: i32) -> (i32, i32) {
    %c0_i32 = arith.constant 0 : i32
    %c0_i32_0 = arith.constant 0 : i32
    return %arg0, %c0_i32 : i32, i32
  }
}

</mosaic_0001>

<bundles_post_ra>
// kernel: _list_mse.5
= control target key start
LH: loop header
LB: loop body
LE: loop exit
PB: predicated region body
PF: predicated region fallthrough
CT: control target
= control target key end

     0   :  { %vm47_vm1 = vmmov 1   ;;  %v48_v7 = vmov 0.0   ;;  %s82_s0 = inlined_call_operand.vmem [shape: f32[16,128], index: 0, kind: input, shape index: {}]   ;;  %s83_s1 = inlined_call_operand.vmem [shape: f32[16,128], index: 1, kind: input, shape index: {}]   ;;  %s84_s2 = inlined_call_operand.vmem [shape: f32[16,128], index: 2, kind: output, shape index: {}]  }
   0x1   :  { %v11_v0 = vld [vmem:[%s82_s0] sm:$0xff]  ;;  %v42_v2 = vld [vmem:[%s82_s0 + $0x8] sm:$0xff] }
   0x2   :  { %v12_v1 = vld [vmem:[%s83_s1] sm:$0xff]  ;;  %v43_v4 = vld [vmem:[%s83_s1 + $0x8] sm:$0xff] }
   0x3   :  { %vm13_vm0 = vcmp.ne.f32.partialorder %v12_v1, %v12_v1  ;;  %v15_v3 = vsub.f32 %v11_v0, %v12_v1  ;;  %vm26_vm3 = vcmp.ne.f32.partialorder %v43_v4, %v43_v4  ;;  %v28_v5 = vsub.f32 %v42_v2, %v43_v4 }
   0x4   :  { %vm14_vm2 = vmxor %vm13_vm0, %vm47_vm1 }
   0x5   :  { %v16_v6 = vsel %vm14_vm2, %v15_v3, 0.0  ;;  %vm27_vm4 = vmxor %vm26_vm3, %vm47_vm1  ;;  %v41_v8 = vsel %vm14_vm2, 1.0, %v48_v7 }
   0x6   :  { %v17_v9 = vmul.f32 %v16_v6, %v16_v6  ;;  %v29_v10 = vsel %vm27_vm4, %v28_v5, 0.0  ;;  %v44_v11 = vsel %vm27_vm4, 1.0, %v48_v7 }
   0x7   :  { %v30_v12 = vmul.f32 %v29_v10, %v29_v10  ;;  %v34_v13 = vadd.f32 %v44_v11, %v41_v8 }
   0x9   :  { %v31_v14 = vadd.f32 %v30_v12, %v17_v9  ;;  %36 = vst [vmem:[%s84_s2 + $0x8] sm:$0xff] %v34_v13 }
   0xb   :  { %35 = vst [vmem:[%s84_s2] sm:$0xff] %v31_v14 }

// kernel: _list_mse.3
= control target key start
LH: loop header
LB: loop body
LE: loop exit
PB: predicated region body
PF: predicated region fallthrough
CT: control target
= control target key end

     0   :  { %7 = vsyncpa [#allocation3], 0  ;;  %s178_s0 = inlined_call_operand.hbm [shape: f32[16,128], index: 0, kind: input, shape index: {}]   ;;  %s179_s1 = inlined_call_operand.hbm [shape: f32[16,128], index: 1, kind: input, shape index: {}]   ;;  %s180_s2 = inlined_call_operand.vmem [shape: f32[16,128], index: 2, kind: output, shape index: {}]  }
   0x1   :  { %8 = vsyncpa [#allocation5], 0  ;;  %s127_s9 = smov [#allocation2]   ;;  %s79_s13 = scalar_lea.hbm %s178_s0, 256 }
   0x2   :  { %s14_s10 = sshll.u32 %s127_s9, 4  ;;  %p80_p0 = scmp.ne.s32.totalorder %s178_s0, %s79_s13  ;;  %s15_s10 = int_to_ptr.vmem [resolvable:$true] %s14_s10 }
   0x3   :  { %p83_p1 = scmp.lt.u32.totalorder %s79_s13, %s178_s0 }
   0x5   :  { %p85_p2 = pnand %p83_p1, %p80_p0 }
   0x7   :  { %88 = shalt.err (!%p85_p2)
}
   0x8   :  { %s89_s18 = scalar_lea.vmem %s15_s10, 256  ;;  %p94_p4 = scmp.lt.s32.totalorder %s15_s10, %s15_s10 }
   0x9   :  { %p90_p3 = scmp.ne.s32.totalorder %s15_s10, %s89_s18  ;;  %p95_p5 = scmp.lt.s32.totalorder %s89_s18, %s89_s18 }
   0xb   :  { %p96_p6 = por %p95_p5, %p94_p4 }
   0xd   :  { %p97_p7 = pnand %p96_p6, %p90_p3 }
   0xf   :  { %100 = shalt.err (!%p97_p7)
}
  0x10   :  { %s128_s19 = smov 128   ;;  %s129_s20 = smov 8  }
  0x11   :  { %20 = dma.hbm_to_vmem [thread:$0]  %s178_s0, 256, %s15_s10, [#allocation3], %s128_s19, %s128_s19, %s129_s20  }
  0x12   :  { %s130_s23 = smov [#allocation4]   ;;  %s101_s27 = scalar_lea.hbm %s179_s1, 256 }
  0x13   :  { %s26_s24 = sshll.u32 %s130_s23, 4  ;;  %p102_p8 = scmp.ne.s32.totalorder %s179_s1, %s101_s27  ;;  %s27_s24 = int_to_ptr.vmem [resolvable:$true] %s26_s24 }
  0x14   :  { %p105_p9 = scmp.lt.u32.totalorder %s101_s27, %s179_s1 }
  0x16   :  { %p107_p10 = pnand %p105_p9, %p102_p8 }
  0x18   :  { %110 = shalt.err (!%p107_p10)
}
  0x19   :  { %s111_s4 = scalar_lea.vmem %s27_s24, 256  ;;  %p116_p12 = scmp.lt.s32.totalorder %s27_s24, %s27_s24 }
  0x1a   :  { %p112_p11 = scmp.ne.s32.totalorder %s27_s24, %s111_s4  ;;  %p117_p13 = scmp.lt.s32.totalorder %s111_s4, %s111_s4 }
  0x1c   :  { %p118_p0 = por %p117_p13, %p116_p12 }
  0x1e   :  { %p119_p1 = pnand %p118_p0, %p112_p11 }
  0x20   :  { %122 = shalt.err (!%p119_p1)
}
  0x21   :  { %32 = dma.hbm_to_vmem [thread:$0]  %s179_s1, 256, %s27_s24, [#allocation5], %s128_s19, %s128_s19, %s129_s20  }
  0x22   :  { %123 = dma.done.wait [#allocation3], 256  }
  0x23   :  { %124 = vsyncadd [#allocation3], 4294967040 }
  0x24   :  { %125 = dma.done.wait [#allocation5], 256  }
  0x25   :  { %126 = vsyncadd [#allocation5], 4294967040  ;;  %v39_v0 = vld [vmem:[#allocation2] sm:$0xff]  ;;  %v40_v1 = vld [vmem:[#allocation4] sm:$0xff]  ;;  %vm131_vm1 = vmmov 1   ;;  %v132_v7 = vmov 0.0  }
  0x26   :  { %v51_v2 = vld [vmem:[#allocation2 + $0x8] sm:$0xff]  ;;  %vm41_vm0 = vcmp.ne.f32.partialorder %v40_v1, %v40_v1  ;;  %v43_v3 = vsub.f32 %v39_v0, %v40_v1  ;;  %v53_v4 = vld [vmem:[#allocation4 + $0x8] sm:$0xff] }
  0x27   :  { %vm42_vm2 = vmxor %vm41_vm0, %vm131_vm1  ;;  %vm54_vm3 = vcmp.ne.f32.partialorder %v53_v4, %v53_v4  ;;  %v56_v5 = vsub.f32 %v51_v2, %v53_v4 }
  0x28   :  { %v44_v6 = vsel %vm42_vm2, %v43_v3, 0.0  ;;  %vm55_vm4 = vmxor %vm54_vm3, %vm131_vm1  ;;  %v71_v8 = vsel %vm42_vm2, 1.0, %v132_v7 }
  0x29   :  { %v45_v9 = vmul.f32 %v44_v6, %v44_v6  ;;  %v57_v10 = vsel %vm55_vm4, %v56_v5, 0.0  ;;  %v72_v11 = vsel %vm55_vm4, 1.0, %v132_v7 }
  0x2a   :  { %v58_v12 = vmul.f32 %v57_v10, %v57_v10  ;;  %v62_v13 = vadd.f32 %v72_v11, %v71_v8 }
  0x2c   :  { %v59_v14 = vadd.f32 %v58_v12, %v45_v9  ;;  %64 = vst [vmem:[%s180_s2 + $0x8] sm:$0xff] %v62_v13 }
  0x2e   :  { %63 = vst [vmem:[%s180_s2] sm:$0xff] %v59_v14 }
  0x2f   :  { %69 = vsyncpa [#allocation3], 1 }
  0x30   :  { %70 = vsyncpa [#allocation5], 1 }

// kernel: _list_mse.4
= control target key start
LH: loop header
LB: loop body
LE: loop exit
PB: predicated region body
PF: predicated region fallthrough
CT: control target
= control target key end

     0   :  { %vm79_vm1 = vmmov 1   ;;  %v80_v13 = vmov 0.0   ;;  %s130_s0 = inlined_call_operand.vmem [shape: f32[32,128], index: 0, kind: input, shape index: {}]   ;;  %s131_s1 = inlined_call_operand.vmem [shape: f32[32,128], index: 1, kind: input, shape index: {}]   ;;  %s132_s2 = inlined_call_operand.vmem [shape: f32[16,128], index: 2, kind: output, shape index: {}]  }
   0x1   :  { %v11_v0 = vld [vmem:[%s130_s0] sm:$0xff]  ;;  %v68_v2 = vld [vmem:[%s130_s0 + $0x8] sm:$0xff]  ;;  %v71_v5 = vld [vmem:[%s130_s0 + $0x10] sm:$0xff] }
   0x2   :  { %v12_v1 = vld [vmem:[%s131_s1] sm:$0xff]  ;;  %v69_v4 = vld [vmem:[%s131_s1 + $0x8] sm:$0xff]  ;;  %v72_v6 = vld [vmem:[%s131_s1 + $0x10] sm:$0xff] }
   0x3   :  { %vm13_vm0 = vcmp.ne.f32.partialorder %v12_v1, %v12_v1  ;;  %v15_v3 = vsub.f32 %v11_v0, %v12_v1  ;;  %vm26_vm3 = vcmp.ne.f32.partialorder %v69_v4, %v69_v4  ;;  %v28_v7 = vsub.f32 %v68_v2, %v69_v4  ;;  %v74_v9 = vld [vmem:[%s130_s0 + $0x18] sm:$0xff] }
   0x4   :  { %vm14_vm2 = vmxor %vm13_vm0, %vm79_vm1  ;;  %vm39_vm4 = vcmp.ne.f32.partialorder %v72_v6, %v72_v6  ;;  %v41_v8 = vsub.f32 %v71_v5, %v72_v6  ;;  %v75_v10 = vld [vmem:[%s131_s1 + $0x18] sm:$0xff] }
   0x5   :  { %v16_v11 = vsel %vm14_vm2, %v15_v3, 0.0  ;;  %vm27_vm5 = vmxor %vm26_vm3, %vm79_vm1  ;;  %vm52_vm6 = vcmp.ne.f32.partialorder %v75_v10, %v75_v10  ;;  %v54_v12 = vsub.f32 %v74_v9, %v75_v10  ;;  %v67_v14 = vsel %vm14_vm2, 1.0, %v80_v13 }
   0x6   :  { %v17_v15 = vmul.f32 %v16_v11, %v16_v11  ;;  %v29_v16 = vsel %vm27_vm5, %v28_v7, 0.0  ;;  %vm40_vm7 = vmxor %vm39_vm4, %vm79_vm1  ;;  %v70_v17 = vsel %vm27_vm5, 1.0, %v80_v13 }
   0x7   :  { %v30_v18 = vmul.f32 %v29_v16, %v29_v16  ;;  %v42_v19 = vsel %vm40_vm7, %v41_v8, 0.0  ;;  %vm53_vm8 = vmxor %vm52_vm6, %vm79_vm1  ;;  %v34_v20 = vadd.f32 %v70_v17, %v67_v14  ;;  %v73_v21 = vsel %vm40_vm7, 1.0, %v80_v13 }
   0x8   :  { %v43_v22 = vmul.f32 %v42_v19, %v42_v19  ;;  %v55_v23 = vsel %vm53_vm8, %v54_v12, 0.0  ;;  %v76_v24 = vsel %vm53_vm8, 1.0, %v80_v13 }
   0x9   :  { %v31_v25 = vadd.f32 %v30_v18, %v17_v15  ;;  %v56_v26 = vmul.f32 %v55_v23, %v55_v23  ;;  %v47_v27 = vadd.f32 %v73_v21, %v34_v20 }
   0xb   :  { %v44_v28 = vadd.f32 %v43_v22, %v31_v25  ;;  %v60_v29 = vadd.f32 %v76_v24, %v47_v27 }
   0xd   :  { %v57_v30 = vadd.f32 %v56_v26, %v44_v28  ;;  %62 = vst [vmem:[%s132_s2 + $0x8] sm:$0xff] %v60_v29 }
   0xf   :  { %61 = vst [vmem:[%s132_s2] sm:$0xff] %v57_v30 }

</bundles_post_ra>
